<compile_context>
chip_gen: v7x
topology: tpu7x:2x2x1
jax: 0.10.0
libtpu: 0.0.40
codegen_flags: <defaults>
</compile_context>

<pallas_src>
import functools

import numpy as np
import jax
import jax.numpy as jnp
from jax import lax
from jax.experimental import pallas as pl
from jax.experimental.pallas import tpu as pltpu


# ------------------------- in-kernel spatial shifts ------------------------ #

def _col_shift(a, col, dx, H, W):
    """b[:, h*W + w] = a[:, h*W + (w + dx) % W]   (circular column shift)."""
    HW = H * W
    if dx == 0:
        return a
    if dx == 1:
        main = pltpu.roll(a, HW - 1, axis=1)       # b[j] = a[(j + 1) % HW]
        wrap = pltpu.roll(a, W - 1, axis=1)        # b[j] = a[j - (W - 1)]
        return jnp.where(col == W - 1, wrap, main)
    else:  # dx == -1
        main = pltpu.roll(a, 1, axis=1)            # b[j] = a[(j - 1) % HW]
        wrap = pltpu.roll(a, HW - W + 1, axis=1)   # b[j] = a[j + (W - 1)]
        return jnp.where(col == 0, wrap, main)


def _im2col_3x3(a, H, W):
    """(Cin, H*W) -> (9*Cin, H*W) circularly-padded 3x3 patch matrix.

    Row ordering is (ky, kx, cin), matching _w_mat():
      patches[(ky*3+kx)*Cin + c, h*W + w] = a[c, ((h+ky-1)%H)*W + (w+kx-1)%W]
    """
    HW = H * W
    col = jax.lax.broadcasted_iota(jnp.int32, a.shape, 1) % W
    cols = jnp.concatenate(
        [_col_shift(a, col, -1, H, W), a, _col_shift(a, col, 1, H, W)],
        axis=0)                                    # (3*Cin, HW), kx = 0,1,2
    up = pltpu.roll(cols, W, axis=1)               # dy = -1 (ky = 0)
    down = pltpu.roll(cols, HW - W, axis=1)        # dy = +1 (ky = 2)
    return jnp.concatenate([up, cols, down], axis=0)


# ------------------------------ fused kernel ------------------------------- #

def _reverse_net_c_kernel(x_ref, w0_ref, b0_ref, w1_ref, b1_ref, w2_ref,
                          b2_ref, w3_ref, b3_ref, w4_ref, b4_ref, alpha_ref,
                          o_ref, *, H, W):
    x = x_ref[0]                                             # (1, H*W)

    # conv0: 1x1, Cin=1  ->  outer product on the VPU + ReLU.
    h = jnp.maximum(w0_ref[...] * x + b0_ref[...], 0.0)      # (8, H*W)

    def conv3x3(a, w_ref, b_ref):
        patches = _im2col_3x3(a, H, W)                       # (9*Cin, H*W)
        y = jnp.dot(w_ref[...], patches,
                    preferred_element_type=jnp.float32)      # (Cout, H*W)
        return y + b_ref[...]

    def prelu(y, slope):
        return jnp.where(y > 0.0, y, slope * y)

    h = prelu(conv3x3(h, w1_ref, b1_ref), alpha_ref[0])      # (16, H*W)
    h = prelu(conv3x3(h, w2_ref, b2_ref), alpha_ref[1])      # (8,  H*W)
    h = prelu(conv3x3(h, w3_ref, b3_ref), alpha_ref[2])      # (8,  H*W); ch 4..7 are zero pad
    y = conv3x3(h, w4_ref, b4_ref)                           # (1,  H*W)
    # sigmoid: exp on the EUP; exp overflow for very negative y -> 1/inf = 0 (correct).
    o_ref[0] = (1.0 / (1.0 + jnp.exp(-y))).astype(o_ref.dtype)


# ------------------------------ host wrapper ------------------------------- #

def _w_mat(w_hwio):
    """HWIO (3,3,Cin,Cout) -> (Cout, 9*Cin), row order (ky, kx, cin)."""
    kh, kw, cin, cout = w_hwio.shape
    return jnp.transpose(w_hwio, (3, 0, 1, 2)).reshape(cout, kh * kw * cin)


def reverse_net_c(x_nchw, z, params):
    """Forward pass of ReverseNetC.  `z` is accepted but unused (as in torch)."""
    del z  # unused by ReverseNetC.forward
    N, C, H, W = x_nchw.shape
    assert C == 1
    HW = H * W
    x_flat = x_nchw.reshape(N, 1, HW).astype(jnp.float32)    # C=1: row-major h*W+w

    # conv0 weights as a column vector for the outer-product form.
    w0 = params["w0"].reshape(1, 8).T                        # (8, 1)
    b0 = params["b0"].reshape(8, 1)

    # Zero-pad layer-3 Cout and layer-4 Cin from 4 -> 8 so all in-kernel
    # sublane concats are 8-aligned.  Padded channels stay exactly zero.
    w3p = jnp.pad(params["w3"], ((0, 0), (0, 0), (0, 0), (0, 4)))
    b3p = jnp.pad(params["b3"], (0, 4))
    w4p = jnp.pad(params["w4"], ((0, 0), (0, 0), (0, 4), (0, 0)))

    w1m, b1 = _w_mat(params["w1"]), params["b1"].reshape(-1, 1)   # (16, 72), (16, 1)
    w2m, b2 = _w_mat(params["w2"]), params["b2"].reshape(-1, 1)   # (8, 144), (8, 1)
    w3m, b3 = _w_mat(w3p), b3p.reshape(-1, 1)                     # (8, 72),  (8, 1)
    w4m, b4 = _w_mat(w4p), params["b4"].reshape(-1, 1)            # (1, 72),  (1, 1)

    alphas = jnp.stack([params["a1"][0, 0], params["a2"][0, 0],
                        params["a3"][0, 0]]).astype(jnp.float32)  # (3,) SMEM scalars

    def full(a):
        return pl.BlockSpec(a.shape, lambda n: (0,) * a.ndim)

    out = pl.pallas_call(
        functools.partial(_reverse_net_c_kernel, H=H, W=W),
        out_shape=jax.ShapeDtypeStruct((N, 1, HW), jnp.float32),
        grid=(N,),
        in_specs=[
            pl.BlockSpec((1, 1, HW), lambda n: (n, 0, 0)),
            full(w0), full(b0),
            full(w1m), full(b1),
            full(w2m), full(b2),
            full(w3m), full(b3),
            full(w4m), full(b4),
            pl.BlockSpec(memory_space=pltpu.MemorySpace.SMEM),
        ],
        out_specs=pl.BlockSpec((1, 1, HW), lambda n: (n, 0, 0)),
        compiler_params=pltpu.CompilerParams(
            dimension_semantics=("parallel",)),
    )(x_flat, w0, b0, w1m, b1, w2m, b2, w3m, b3, w4m, b4, alphas)

    return out.reshape(N, 1, H, W)


# ------------------------- Params / reference model ------------------------ #

def init_params(key):
    ks = jax.random.split(key, 10)

    def conv_w(k, kh, kw, cin, cout):
        bound = 1.0 / np.sqrt(cin * kh * kw)
        return jax.random.uniform(k, (kh, kw, cin, cout), jnp.float32,
                                  -bound, bound)

    def conv_b(k, kh, kw, cin, cout):
        bound = 1.0 / np.sqrt(cin * kh * kw)
        return jax.random.uniform(k, (cout,), jnp.float32, -bound, bound)

    p = {
        "w0": conv_w(ks[0], 1, 1, 1, 8), "b0": conv_b(ks[1], 1, 1, 1, 8),
        "w1": conv_w(ks[2], 3, 3, 8, 16), "b1": conv_b(ks[3], 3, 3, 8, 16),
        "w2": conv_w(ks[4], 3, 3, 16, 8), "b2": conv_b(ks[5], 3, 3, 16, 8),
        "w3": conv_w(ks[6], 3, 3, 8, 4), "b3": conv_b(ks[7], 3, 3, 8, 4),
        "w4": conv_w(ks[8], 3, 3, 4, 1), "b4": conv_b(ks[9], 3, 3, 4, 1),
        # nn.PReLU() default: single slope = 0.25
        "a1": jnp.full((1, 1), 0.25, jnp.float32),
        "a2": jnp.full((1, 1), 0.25, jnp.float32),
        "a3": jnp.full((1, 1), 0.25, jnp.float32),
    }
    return p


def ref_forward(x_nchw, params):
    """Pure-JAX reference matching the PyTorch module semantics."""
    x = jnp.transpose(x_nchw, (0, 2, 3, 1))  # NHWC

    def conv(h, w, b, circular):
        if circular:
            h = jnp.pad(h, ((0, 0), (1, 1), (1, 1), (0, 0)), mode="wrap")
        y = lax.conv_general_dilated(
            h, w, window_strides=(1, 1), padding="VALID",
            dimension_numbers=("NHWC", "HWIO", "NHWC"))
        return y + b.reshape(1, 1, 1, -1)

    def prelu(y, a):
        return jnp.where(y > 0.0, y, a[0, 0] * y)

    h = jnp.maximum(conv(x, params["w0"], params["b0"], False), 0.0)
    h = prelu(conv(h, params["w1"], params["b1"], True), params["a1"])
    h = prelu(conv(h, params["w2"], params["b2"], True), params["a2"])
    h = prelu(conv(h, params["w3"], params["b3"], True), params["a3"])
    h = jax.nn.sigmoid(conv(h, params["w4"], params["b4"], True))
    return jnp.transpose(h, (0, 3, 1, 2))  # NCHW


# ---------------------------------- Main ----------------------------------- #

if __name__ == "__main__":
    key = jax.random.PRNGKey(0)
    kx, kz, kp = jax.random.split(key, 3)

    x = jax.random.normal(kx, (2, 1, 16, 16), jnp.float32)   # NCHW, 1 input channel
    z = jax.random.normal(kz, (2, 8), jnp.float32)           # unused by forward()
    params = init_params(kp)

    fwd = jax.jit(reverse_net_c)
    out = jax.block_until_ready(fwd(x, z, params))

    ref = jax.block_until_ready(ref_forward(x, params))
    np.testing.assert_allclose(np.asarray(out), np.asarray(ref),
                               rtol=2e-5, atol=2e-5)
    assert out.shape == (2, 1, 16, 16)

    print("KERNEL_OK")
</pallas_src>

<mosaic_0001>
module attributes {stable_mosaic.version = 11 : i64} {
  func.func @_reverse_net_c_kernel(%arg0: i32, %arg1: memref<1x1x256xf32, #tpu.memory_space<vmem>>, %arg2: memref<8x1xf32, #tpu.memory_space<vmem>>, %arg3: memref<8x1xf32, #tpu.memory_space<vmem>>, %arg4: memref<16x72xf32, #tpu.memory_space<vmem>>, %arg5: memref<16x1xf32, #tpu.memory_space<vmem>>, %arg6: memref<8x144xf32, #tpu.memory_space<vmem>>, %arg7: memref<8x1xf32, #tpu.memory_space<vmem>>, %arg8: memref<8x72xf32, #tpu.memory_space<vmem>>, %arg9: memref<8x1xf32, #tpu.memory_space<vmem>>, %arg10: memref<1x72xf32, #tpu.memory_space<vmem>>, %arg11: memref<1x1xf32, #tpu.memory_space<vmem>>, %arg12: memref<3xf32, #tpu.memory_space<smem>>, %arg13: memref<1x1x256xf32, #tpu.memory_space<vmem>>) attributes {dimension_semantics = [#tpu.dimension_semantics<parallel>], iteration_bounds = array<i64: 2>, scalar_prefetch = 0 : i64, scratch_operands = 0 : i64, tpu.core_type = #tpu.core_type<tc>, window_params = [{transform_indices = @transform_0, window_bounds = array<i64: 1, 1, 256>}, {pipeline_mode = #tpu.pipeline_mode<synchronous>, transform_indices = @transform_1, window_bounds = array<i64: 8, 1>}, {pipeline_mode = #tpu.pipeline_mode<synchronous>, transform_indices = @transform_2, window_bounds = array<i64: 8, 1>}, {pipeline_mode = #tpu.pipeline_mode<synchronous>, transform_indices = @transform_3, window_bounds = array<i64: 16, 72>}, {pipeline_mode = #tpu.pipeline_mode<synchronous>, transform_indices = @transform_4, window_bounds = array<i64: 16, 1>}, {pipeline_mode = #tpu.pipeline_mode<synchronous>, transform_indices = @transform_5, window_bounds = array<i64: 8, 144>}, {pipeline_mode = #tpu.pipeline_mode<synchronous>, transform_indices = @transform_6, window_bounds = array<i64: 8, 1>}, {pipeline_mode = #tpu.pipeline_mode<synchronous>, transform_indices = @transform_7, window_bounds = array<i64: 8, 72>}, {pipeline_mode = #tpu.pipeline_mode<synchronous>, transform_indices = @transform_8, window_bounds = array<i64: 8, 1>}, {pipeline_mode = #tpu.pipeline_mode<synchronous>, transform_indices = @transform_9, window_bounds = array<i64: 1, 72>}, {pipeline_mode = #tpu.pipeline_mode<synchronous>, transform_indices = @transform_10, window_bounds = array<i64: 1, 1>}, {transform_indices = @transform_11, window_bounds = array<i64: 3>}, {transform_indices = @transform_12, window_bounds = array<i64: 1, 1, 256>}]} {
    %c0 = arith.constant 0 : index
    %c0_0 = arith.constant 0 : index
    %c0_1 = arith.constant 0 : index
    %0 = vector.load %arg1[%c0, %c0_0, %c0_1] : memref<1x1x256xf32, #tpu.memory_space<vmem>>, vector<1x1x256xf32>
    %1 = vector.shape_cast %0 : vector<1x1x256xf32> to vector<1x256xf32>
    %c0_2 = arith.constant 0 : index
    %c0_3 = arith.constant 0 : index
    %2 = vector.load %arg2[%c0_2, %c0_3] : memref<8x1xf32, #tpu.memory_space<vmem>>, vector<8x1xf32>
    %3 = vector.broadcast %2 : vector<8x1xf32> to vector<8x256xf32>
    %4 = vector.broadcast %1 : vector<1x256xf32> to vector<8x256xf32>
    %5 = arith.mulf %3, %4 : vector<8x256xf32>
    %c0_4 = arith.constant 0 : index
    %c0_5 = arith.constant 0 : index
    %6 = vector.load %arg3[%c0_4, %c0_5] : memref<8x1xf32, #tpu.memory_space<vmem>>, vector<8x1xf32>
    %7 = vector.broadcast %6 : vector<8x1xf32> to vector<8x256xf32>
    %8 = arith.addf %5, %7 : vector<8x256xf32>
    %cst = arith.constant 0.000000e+00 : f32
    %9 = vector.broadcast %cst : f32 to vector<8x256xf32>
    %10 = arith.maximumf %8, %9 : vector<8x256xf32>
    %11 = tpu.iota {dimensions = array<i32: 1>} : vector<8x256xi32>
    %c16_i32 = arith.constant 16 : i32
    %c0_i32 = arith.constant 0 : i32
    %12 = arith.cmpi eq, %c16_i32, %c0_i32 : i32
    %c1_i32 = arith.constant 1 : i32
    %13 = arith.select %12, %c1_i32, %c16_i32 : i32
    %14 = vector.broadcast %13 : i32 to vector<8x256xi32>
    %15 = arith.remsi %11, %14 : vector<8x256xi32>
    %c0_i32_6 = arith.constant 0 : i32
    %16 = vector.broadcast %c0_i32_6 : i32 to vector<8x256xi32>
    %17 = arith.cmpi ne, %15, %16 : vector<8x256xi32>
    %c0_i32_7 = arith.constant 0 : i32
    %18 = vector.broadcast %c0_i32_7 : i32 to vector<8x256xi32>
    %19 = arith.cmpi slt, %15, %18 : vector<8x256xi32>
    %c0_i32_8 = arith.constant 0 : i32
    %20 = arith.cmpi slt, %13, %c0_i32_8 : i32
    %21 = vector.broadcast %20 : i1 to vector<8x256xi1>
    %22 = vector.broadcast %21 : vector<8x256xi1> to vector<8x256xi1>
    %23 = arith.xori %19, %22 : vector<8x256xi1>
    %24 = arith.andi %23, %17 : vector<8x256xi1>
    %25 = vector.broadcast %13 : i32 to vector<8x256xi32>
    %26 = arith.addi %15, %25 : vector<8x256xi32>
    %27 = arith.select %24, %26, %15 : vector<8x256xi1>, vector<8x256xi32>
    %c1_i32_9 = arith.constant 1 : i32
    %28 = tpu.dynamic_rotate %10 by %c1_i32_9 dim 1 : vector<8x256xf32>, i32 -> vector<8x256xf32>
    %c241_i32 = arith.constant 241 : i32
    %29 = tpu.dynamic_rotate %10 by %c241_i32 dim 1 : vector<8x256xf32>, i32 -> vector<8x256xf32>
    %c0_i32_10 = arith.constant 0 : i32
    %30 = vector.broadcast %c0_i32_10 : i32 to vector<8x256xi32>
    %31 = arith.cmpi eq, %27, %30 : vector<8x256xi32>
    %32 = arith.select %31, %29, %28 : vector<8x256xi1>, vector<8x256xf32>
    %c255_i32 = arith.constant 255 : i32
    %33 = tpu.dynamic_rotate %10 by %c255_i32 dim 1 : vector<8x256xf32>, i32 -> vector<8x256xf32>
    %c15_i32 = arith.constant 15 : i32
    %34 = tpu.dynamic_rotate %10 by %c15_i32 dim 1 : vector<8x256xf32>, i32 -> vector<8x256xf32>
    %c15_i32_11 = arith.constant 15 : i32
    %35 = vector.broadcast %c15_i32_11 : i32 to vector<8x256xi32>
    %36 = arith.cmpi eq, %27, %35 : vector<8x256xi32>
    %37 = arith.select %36, %34, %33 : vector<8x256xi1>, vector<8x256xf32>
    %38 = tpu.concatenate %32, %10, %37 in 0 : vector<8x256xf32>, vector<8x256xf32>, vector<8x256xf32> -> vector<24x256xf32>
    %c16_i32_12 = arith.constant 16 : i32
    %39 = tpu.dynamic_rotate %38 by %c16_i32_12 dim 1 : vector<24x256xf32>, i32 -> vector<24x256xf32>
    %c240_i32 = arith.constant 240 : i32
    %40 = tpu.dynamic_rotate %38 by %c240_i32 dim 1 : vector<24x256xf32>, i32 -> vector<24x256xf32>
    %41 = tpu.concatenate %39, %38, %40 in 0 : vector<24x256xf32>, vector<24x256xf32>, vector<24x256xf32> -> vector<72x256xf32>
    %c0_13 = arith.constant 0 : index
    %c0_14 = arith.constant 0 : index
    %42 = vector.load %arg4[%c0_13, %c0_14] : memref<16x72xf32, #tpu.memory_space<vmem>>, vector<16x72xf32>
    %cst_15 = arith.constant dense<0.000000e+00> : vector<16x256xf32>
    %43 = tpu.matmul %42, %41, %cst_15 {dimension_numbers = #tpu.dot_dimension_numbers<[1], [0], [0], [1], [0, 0, 1, 1], [], []>} : vector<16x72xf32>, vector<72x256xf32>, vector<16x256xf32> -> vector<16x256xf32>
    %c0_16 = arith.constant 0 : index
    %c0_17 = arith.constant 0 : index
    %44 = vector.load %arg5[%c0_16, %c0_17] : memref<16x1xf32, #tpu.memory_space<vmem>>, vector<16x1xf32>
    %45 = vector.broadcast %44 : vector<16x1xf32> to vector<16x256xf32>
    %46 = arith.addf %43, %45 : vector<16x256xf32>
    %c0_18 = arith.constant 0 : index
    %47 = memref.load %arg12[%c0_18] : memref<3xf32, #tpu.memory_space<smem>>
    %cst_19 = arith.constant 0.000000e+00 : f32
    %48 = vector.broadcast %cst_19 : f32 to vector<16x256xf32>
    %49 = arith.cmpf ogt, %46, %48 : vector<16x256xf32>
    %50 = vector.broadcast %47 : f32 to vector<16x256xf32>
    %51 = arith.mulf %50, %46 : vector<16x256xf32>
    %52 = arith.select %49, %46, %51 : vector<16x256xi1>, vector<16x256xf32>
    %53 = tpu.iota {dimensions = array<i32: 1>} : vector<16x256xi32>
    %c16_i32_20 = arith.constant 16 : i32
    %c0_i32_21 = arith.constant 0 : i32
    %54 = arith.cmpi eq, %c16_i32_20, %c0_i32_21 : i32
    %c1_i32_22 = arith.constant 1 : i32
    %55 = arith.select %54, %c1_i32_22, %c16_i32_20 : i32
    %56 = vector.broadcast %55 : i32 to vector<16x256xi32>
    %57 = arith.remsi %53, %56 : vector<16x256xi32>
    %c0_i32_23 = arith.constant 0 : i32
    %58 = vector.broadcast %c0_i32_23 : i32 to vector<16x256xi32>
    %59 = arith.cmpi ne, %57, %58 : vector<16x256xi32>
    %c0_i32_24 = arith.constant 0 : i32
    %60 = vector.broadcast %c0_i32_24 : i32 to vector<16x256xi32>
    %61 = arith.cmpi slt, %57, %60 : vector<16x256xi32>
    %c0_i32_25 = arith.constant 0 : i32
    %62 = arith.cmpi slt, %55, %c0_i32_25 : i32
    %63 = vector.broadcast %62 : i1 to vector<16x256xi1>
    %64 = vector.broadcast %63 : vector<16x256xi1> to vector<16x256xi1>
    %65 = arith.xori %61, %64 : vector<16x256xi1>
    %66 = arith.andi %65, %59 : vector<16x256xi1>
    %67 = vector.broadcast %55 : i32 to vector<16x256xi32>
    %68 = arith.addi %57, %67 : vector<16x256xi32>
    %69 = arith.select %66, %68, %57 : vector<16x256xi1>, vector<16x256xi32>
    %c1_i32_26 = arith.constant 1 : i32
    %70 = tpu.dynamic_rotate %52 by %c1_i32_26 dim 1 : vector<16x256xf32>, i32 -> vector<16x256xf32>
    %c241_i32_27 = arith.constant 241 : i32
    %71 = tpu.dynamic_rotate %52 by %c241_i32_27 dim 1 : vector<16x256xf32>, i32 -> vector<16x256xf32>
    %c0_i32_28 = arith.constant 0 : i32
    %72 = vector.broadcast %c0_i32_28 : i32 to vector<16x256xi32>
    %73 = arith.cmpi eq, %69, %72 : vector<16x256xi32>
    %74 = arith.select %73, %71, %70 : vector<16x256xi1>, vector<16x256xf32>
    %c255_i32_29 = arith.constant 255 : i32
    %75 = tpu.dynamic_rotate %52 by %c255_i32_29 dim 1 : vector<16x256xf32>, i32 -> vector<16x256xf32>
    %c15_i32_30 = arith.constant 15 : i32
    %76 = tpu.dynamic_rotate %52 by %c15_i32_30 dim 1 : vector<16x256xf32>, i32 -> vector<16x256xf32>
    %c15_i32_31 = arith.constant 15 : i32
    %77 = vector.broadcast %c15_i32_31 : i32 to vector<16x256xi32>
    %78 = arith.cmpi eq, %69, %77 : vector<16x256xi32>
    %79 = arith.select %78, %76, %75 : vector<16x256xi1>, vector<16x256xf32>
    %80 = tpu.concatenate %74, %52, %79 in 0 : vector<16x256xf32>, vector<16x256xf32>, vector<16x256xf32> -> vector<48x256xf32>
    %c16_i32_32 = arith.constant 16 : i32
    %81 = tpu.dynamic_rotate %80 by %c16_i32_32 dim 1 : vector<48x256xf32>, i32 -> vector<48x256xf32>
    %c240_i32_33 = arith.constant 240 : i32
    %82 = tpu.dynamic_rotate %80 by %c240_i32_33 dim 1 : vector<48x256xf32>, i32 -> vector<48x256xf32>
    %83 = tpu.concatenate %81, %80, %82 in 0 : vector<48x256xf32>, vector<48x256xf32>, vector<48x256xf32> -> vector<144x256xf32>
    %c0_34 = arith.constant 0 : index
    %c0_35 = arith.constant 0 : index
    %84 = vector.load %arg6[%c0_34, %c0_35] : memref<8x144xf32, #tpu.memory_space<vmem>>, vector<8x144xf32>
    %cst_36 = arith.constant dense<0.000000e+00> : vector<8x256xf32>
    %85 = tpu.matmul %84, %83, %cst_36 {dimension_numbers = #tpu.dot_dimension_numbers<[1], [0], [0], [1], [0, 0, 1, 1], [], []>} : vector<8x144xf32>, vector<144x256xf32>, vector<8x256xf32> -> vector<8x256xf32>
    %c0_37 = arith.constant 0 : index
    %c0_38 = arith.constant 0 : index
    %86 = vector.load %arg7[%c0_37, %c0_38] : memref<8x1xf32, #tpu.memory_space<vmem>>, vector<8x1xf32>
    %87 = vector.broadcast %86 : vector<8x1xf32> to vector<8x256xf32>
    %88 = arith.addf %85, %87 : vector<8x256xf32>
    %c1 = arith.constant 1 : index
    %89 = memref.load %arg12[%c1] : memref<3xf32, #tpu.memory_space<smem>>
    %cst_39 = arith.constant 0.000000e+00 : f32
    %90 = vector.broadcast %cst_39 : f32 to vector<8x256xf32>
    %91 = arith.cmpf ogt, %88, %90 : vector<8x256xf32>
    %92 = vector.broadcast %89 : f32 to vector<8x256xf32>
    %93 = arith.mulf %92, %88 : vector<8x256xf32>
    %94 = arith.select %91, %88, %93 : vector<8x256xi1>, vector<8x256xf32>
    %95 = tpu.iota {dimensions = array<i32: 1>} : vector<8x256xi32>
    %c16_i32_40 = arith.constant 16 : i32
    %c0_i32_41 = arith.constant 0 : i32
    %96 = arith.cmpi eq, %c16_i32_40, %c0_i32_41 : i32
    %c1_i32_42 = arith.constant 1 : i32
    %97 = arith.select %96, %c1_i32_42, %c16_i32_40 : i32
    %98 = vector.broadcast %97 : i32 to vector<8x256xi32>
    %99 = arith.remsi %95, %98 : vector<8x256xi32>
    %c0_i32_43 = arith.constant 0 : i32
    %100 = vector.broadcast %c0_i32_43 : i32 to vector<8x256xi32>
    %101 = arith.cmpi ne, %99, %100 : vector<8x256xi32>
    %c0_i32_44 = arith.constant 0 : i32
    %102 = vector.broadcast %c0_i32_44 : i32 to vector<8x256xi32>
    %103 = arith.cmpi slt, %99, %102 : vector<8x256xi32>
    %c0_i32_45 = arith.constant 0 : i32
    %104 = arith.cmpi slt, %97, %c0_i32_45 : i32
    %105 = vector.broadcast %104 : i1 to vector<8x256xi1>
    %106 = vector.broadcast %105 : vector<8x256xi1> to vector<8x256xi1>
    %107 = arith.xori %103, %106 : vector<8x256xi1>
    %108 = arith.andi %107, %101 : vector<8x256xi1>
    %109 = vector.broadcast %97 : i32 to vector<8x256xi32>
    %110 = arith.addi %99, %109 : vector<8x256xi32>
    %111 = arith.select %108, %110, %99 : vector<8x256xi1>, vector<8x256xi32>
    %c1_i32_46 = arith.constant 1 : i32
    %112 = tpu.dynamic_rotate %94 by %c1_i32_46 dim 1 : vector<8x256xf32>, i32 -> vector<8x256xf32>
    %c241_i32_47 = arith.constant 241 : i32
    %113 = tpu.dynamic_rotate %94 by %c241_i32_47 dim 1 : vector<8x256xf32>, i32 -> vector<8x256xf32>
    %c0_i32_48 = arith.constant 0 : i32
    %114 = vector.broadcast %c0_i32_48 : i32 to vector<8x256xi32>
    %115 = arith.cmpi eq, %111, %114 : vector<8x256xi32>
    %116 = arith.select %115, %113, %112 : vector<8x256xi1>, vector<8x256xf32>
    %c255_i32_49 = arith.constant 255 : i32
    %117 = tpu.dynamic_rotate %94 by %c255_i32_49 dim 1 : vector<8x256xf32>, i32 -> vector<8x256xf32>
    %c15_i32_50 = arith.constant 15 : i32
    %118 = tpu.dynamic_rotate %94 by %c15_i32_50 dim 1 : vector<8x256xf32>, i32 -> vector<8x256xf32>
    %c15_i32_51 = arith.constant 15 : i32
    %119 = vector.broadcast %c15_i32_51 : i32 to vector<8x256xi32>
    %120 = arith.cmpi eq, %111, %119 : vector<8x256xi32>
    %121 = arith.select %120, %118, %117 : vector<8x256xi1>, vector<8x256xf32>
    %122 = tpu.concatenate %116, %94, %121 in 0 : vector<8x256xf32>, vector<8x256xf32>, vector<8x256xf32> -> vector<24x256xf32>
    %c16_i32_52 = arith.constant 16 : i32
    %123 = tpu.dynamic_rotate %122 by %c16_i32_52 dim 1 : vector<24x256xf32>, i32 -> vector<24x256xf32>
    %c240_i32_53 = arith.constant 240 : i32
    %124 = tpu.dynamic_rotate %122 by %c240_i32_53 dim 1 : vector<24x256xf32>, i32 -> vector<24x256xf32>
    %125 = tpu.concatenate %123, %122, %124 in 0 : vector<24x256xf32>, vector<24x256xf32>, vector<24x256xf32> -> vector<72x256xf32>
    %c0_54 = arith.constant 0 : index
    %c0_55 = arith.constant 0 : index
    %126 = vector.load %arg8[%c0_54, %c0_55] : memref<8x72xf32, #tpu.memory_space<vmem>>, vector<8x72xf32>
    %cst_56 = arith.constant dense<0.000000e+00> : vector<8x256xf32>
    %127 = tpu.matmul %126, %125, %cst_56 {dimension_numbers = #tpu.dot_dimension_numbers<[1], [0], [0], [1], [0, 0, 1, 1], [], []>} : vector<8x72xf32>, vector<72x256xf32>, vector<8x256xf32> -> vector<8x256xf32>
    %c0_57 = arith.constant 0 : index
    %c0_58 = arith.constant 0 : index
    %128 = vector.load %arg9[%c0_57, %c0_58] : memref<8x1xf32, #tpu.memory_space<vmem>>, vector<8x1xf32>
    %129 = vector.broadcast %128 : vector<8x1xf32> to vector<8x256xf32>
    %130 = arith.addf %127, %129 : vector<8x256xf32>
    %c2 = arith.constant 2 : index
    %131 = memref.load %arg12[%c2] : memref<3xf32, #tpu.memory_space<smem>>
    %cst_59 = arith.constant 0.000000e+00 : f32
    %132 = vector.broadcast %cst_59 : f32 to vector<8x256xf32>
    %133 = arith.cmpf ogt, %130, %132 : vector<8x256xf32>
    %134 = vector.broadcast %131 : f32 to vector<8x256xf32>
    %135 = arith.mulf %134, %130 : vector<8x256xf32>
    %136 = arith.select %133, %130, %135 : vector<8x256xi1>, vector<8x256xf32>
    %137 = tpu.iota {dimensions = array<i32: 1>} : vector<8x256xi32>
    %c16_i32_60 = arith.constant 16 : i32
    %c0_i32_61 = arith.constant 0 : i32
    %138 = arith.cmpi eq, %c16_i32_60, %c0_i32_61 : i32
    %c1_i32_62 = arith.constant 1 : i32
    %139 = arith.select %138, %c1_i32_62, %c16_i32_60 : i32
    %140 = vector.broadcast %139 : i32 to vector<8x256xi32>
    %141 = arith.remsi %137, %140 : vector<8x256xi32>
    %c0_i32_63 = arith.constant 0 : i32
    %142 = vector.broadcast %c0_i32_63 : i32 to vector<8x256xi32>
    %143 = arith.cmpi ne, %141, %142 : vector<8x256xi32>
    %c0_i32_64 = arith.constant 0 : i32
    %144 = vector.broadcast %c0_i32_64 : i32 to vector<8x256xi32>
    %145 = arith.cmpi slt, %141, %144 : vector<8x256xi32>
    %c0_i32_65 = arith.constant 0 : i32
    %146 = arith.cmpi slt, %139, %c0_i32_65 : i32
    %147 = vector.broadcast %146 : i1 to vector<8x256xi1>
    %148 = vector.broadcast %147 : vector<8x256xi1> to vector<8x256xi1>
    %149 = arith.xori %145, %148 : vector<8x256xi1>
    %150 = arith.andi %149, %143 : vector<8x256xi1>
    %151 = vector.broadcast %139 : i32 to vector<8x256xi32>
    %152 = arith.addi %141, %151 : vector<8x256xi32>
    %153 = arith.select %150, %152, %141 : vector<8x256xi1>, vector<8x256xi32>
    %c1_i32_66 = arith.constant 1 : i32
    %154 = tpu.dynamic_rotate %136 by %c1_i32_66 dim 1 : vector<8x256xf32>, i32 -> vector<8x256xf32>
    %c241_i32_67 = arith.constant 241 : i32
    %155 = tpu.dynamic_rotate %136 by %c241_i32_67 dim 1 : vector<8x256xf32>, i32 -> vector<8x256xf32>
    %c0_i32_68 = arith.constant 0 : i32
    %156 = vector.broadcast %c0_i32_68 : i32 to vector<8x256xi32>
    %157 = arith.cmpi eq, %153, %156 : vector<8x256xi32>
    %158 = arith.select %157, %155, %154 : vector<8x256xi1>, vector<8x256xf32>
    %c255_i32_69 = arith.constant 255 : i32
    %159 = tpu.dynamic_rotate %136 by %c255_i32_69 dim 1 : vector<8x256xf32>, i32 -> vector<8x256xf32>
    %c15_i32_70 = arith.constant 15 : i32
    %160 = tpu.dynamic_rotate %136 by %c15_i32_70 dim 1 : vector<8x256xf32>, i32 -> vector<8x256xf32>
    %c15_i32_71 = arith.constant 15 : i32
    %161 = vector.broadcast %c15_i32_71 : i32 to vector<8x256xi32>
    %162 = arith.cmpi eq, %153, %161 : vector<8x256xi32>
    %163 = arith.select %162, %160, %159 : vector<8x256xi1>, vector<8x256xf32>
    %164 = tpu.concatenate %158, %136, %163 in 0 : vector<8x256xf32>, vector<8x256xf32>, vector<8x256xf32> -> vector<24x256xf32>
    %c16_i32_72 = arith.constant 16 : i32
    %165 = tpu.dynamic_rotate %164 by %c16_i32_72 dim 1 : vector<24x256xf32>, i32 -> vector<24x256xf32>
    %c240_i32_73 = arith.constant 240 : i32
    %166 = tpu.dynamic_rotate %164 by %c240_i32_73 dim 1 : vector<24x256xf32>, i32 -> vector<24x256xf32>
    %167 = tpu.concatenate %165, %164, %166 in 0 : vector<24x256xf32>, vector<24x256xf32>, vector<24x256xf32> -> vector<72x256xf32>
    %c0_74 = arith.constant 0 : index
    %c0_75 = arith.constant 0 : index
    %168 = vector.load %arg10[%c0_74, %c0_75] : memref<1x72xf32, #tpu.memory_space<vmem>>, vector<1x72xf32>
    %cst_76 = arith.constant dense<0.000000e+00> : vector<1x256xf32>
    %169 = tpu.matmul %168, %167, %cst_76 {dimension_numbers = #tpu.dot_dimension_numbers<[1], [0], [0], [1], [0, 0, 1, 1], [], []>} : vector<1x72xf32>, vector<72x256xf32>, vector<1x256xf32> -> vector<1x256xf32>
    %c0_77 = arith.constant 0 : index
    %c0_78 = arith.constant 0 : index
    %170 = vector.load %arg11[%c0_77, %c0_78] : memref<1x1xf32, #tpu.memory_space<vmem>>, vector<1x1xf32>
    %171 = vector.broadcast %170 : vector<1x1xf32> to vector<1x256xf32>
    %172 = arith.addf %169, %171 : vector<1x256xf32>
    %cst_79 = arith.constant 0.000000e+00 : f32
    %173 = vector.broadcast %cst_79 : f32 to vector<1x256xf32>
    %174 = arith.subf %173, %172 : vector<1x256xf32>
    %175 = math.exp %174 : vector<1x256xf32>
    %cst_80 = arith.constant 1.000000e+00 : f32
    %176 = vector.broadcast %cst_80 : f32 to vector<1x256xf32>
    %177 = arith.addf %176, %175 : vector<1x256xf32>
    %cst_81 = arith.constant 1.000000e+00 : f32
    %178 = vector.broadcast %cst_81 : f32 to vector<1x256xf32>
    %179 = arith.divf %178, %177 : vector<1x256xf32>
    %c0_82 = arith.constant 0 : index
    %c0_83 = arith.constant 0 : index
    %c0_84 = arith.constant 0 : index
    %180 = vector.load %arg13[%c0_82, %c0_83, %c0_84] : memref<1x1x256xf32, #tpu.memory_space<vmem>>, vector<1x1x256xf32>
    %181 = vector.shape_cast %180 : vector<1x1x256xf32> to vector<1x256xf32>
    %182 = vector.shape_cast %179 : vector<1x256xf32> to vector<1x1x256xf32>
    tpu.vector_store %arg13[%c0_82, %c0_83, %c0_84], %182 {strides = array<i32>} : memref<1x1x256xf32, #tpu.memory_space<vmem>>, vector<1x1x256xf32>,
    return
  }
  func.func @transform_0(%arg0: i32) -> (i32, i32, i32) {
    %c0_i32 = arith.constant 0 : i32
    %c0_i32_0 = arith.constant 0 : i32
    %c0_i32_1 = arith.constant 0 : i32
    return %arg0, %c0_i32, %c0_i32_0 : i32, i32, i32
  }
  func.func @transform_1(%arg0: i32) -> (i32, i32) {
    %c0_i32 = arith.constant 0 : i32
    %c0_i32_0 = arith.constant 0 : i32
    %c0_i32_1 = arith.constant 0 : i32
    return %c0_i32, %c0_i32_0 : i32, i32
  }
  func.func @transform_2(%arg0: i32) -> (i32, i32) {
    %c0_i32 = arith.constant 0 : i32
    %c0_i32_0 = arith.constant 0 : i32
    %c0_i32_1 = arith.constant 0 : i32
    return %c0_i32, %c0_i32_0 : i32, i32
  }
  func.func @transform_3(%arg0: i32) -> (i32, i32) {
    %c0_i32 = arith.constant 0 : i32
    %c0_i32_0 = arith.constant 0 : i32
    %c0_i32_1 = arith.constant 0 : i32
    return %c0_i32, %c0_i32_0 : i32, i32
  }
  func.func @transform_4(%arg0: i32) -> (i32, i32) {
    %c0_i32 = arith.constant 0 : i32
    %c0_i32_0 = arith.constant 0 : i32
    %c0_i32_1 = arith.constant 0 : i32
    return %c0_i32, %c0_i32_0 : i32, i32
  }
  func.func @transform_5(%arg0: i32) -> (i32, i32) {
    %c0_i32 = arith.constant 0 : i32
    %c0_i32_0 = arith.constant 0 : i32
    %c0_i32_1 = arith.constant 0 : i32
    return %c0_i32, %c0_i32_0 : i32, i32
  }
  func.func @transform_6(%arg0: i32) -> (i32, i32) {
    %c0_i32 = arith.constant 0 : i32
    %c0_i32_0 = arith.constant 0 : i32
    %c0_i32_1 = arith.constant 0 : i32
    return %c0_i32, %c0_i32_0 : i32, i32
  }
  func.func @transform_7(%arg0: i32) -> (i32, i32) {
    %c0_i32 = arith.constant 0 : i32
    %c0_i32_0 = arith.constant 0 : i32
    %c0_i32_1 = arith.constant 0 : i32
    return %c0_i32, %c0_i32_0 : i32, i32
  }
  func.func @transform_8(%arg0: i32) -> (i32, i32) {
    %c0_i32 = arith.constant 0 : i32
    %c0_i32_0 = arith.constant 0 : i32
    %c0_i32_1 = arith.constant 0 : i32
    return %c0_i32, %c0_i32_0 : i32, i32
  }
  func.func @transform_9(%arg0: i32) -> (i32, i32) {
    %c0_i32 = arith.constant 0 : i32
    %c0_i32_0 = arith.constant 0 : i32
    %c0_i32_1 = arith.constant 0 : i32
    return %c0_i32, %c0_i32_0 : i32, i32
  }
  func.func @transform_10(%arg0: i32) -> (i32, i32) {
    %c0_i32 = arith.constant 0 : i32
    %c0_i32_0 = arith.constant 0 : i32
    %c0_i32_1 = arith.constant 0 : i32
    return %c0_i32, %c0_i32_0 : i32, i32
  }
  func.func @transform_11(%arg0: i32) -> i32 {
    %c0_i32 = arith.constant 0 : i32
    %c0_i32_0 = arith.constant 0 : i32
    return %c0_i32 : i32
  }
  func.func @transform_12(%arg0: i32) -> (i32, i32, i32) {
    %c0_i32 = arith.constant 0 : i32
    %c0_i32_0 = arith.constant 0 : i32
    %c0_i32_1 = arith.constant 0 : i32
    return %arg0, %c0_i32, %c0_i32_0 : i32, i32, i32
  }
}

</mosaic_0001>

<bundles_post_ra>
// kernel: reverse_net_c.1
= control target key start
LH: loop header
LB: loop body
LE: loop exit
PB: predicated region body
PF: predicated region fallthrough
CT: control target
= control target key end

     0   :  { %s2294_s0 = inlined_call_operand.vmem [shape: f32[2,1,256], index: 0, kind: input, shape index: {}]   ;;  %s2295_s1 = inlined_call_operand.vmem [shape: f32[8,1], index: 1, kind: input, shape index: {}]   ;;  %s2296_s2 = inlined_call_operand.vmem [shape: f32[8,1], index: 2, kind: input, shape index: {}]   ;;  %s2297_s3 = inlined_call_operand.vmem [shape: f32[16,72], index: 3, kind: input, shape index: {}]   ;;  %s2298_s4 = inlined_call_operand.vmem [shape: f32[16,1], index: 4, kind: input, shape index: {}]   ;;  %s2299_s5 = inlined_call_operand.vmem [shape: f32[8,144], index: 5, kind: input, shape index: {}]   ;;  %s2300_s6 = inlined_call_operand.vmem [shape: f32[8,1], index: 6, kind: input, shape index: {}]   ;;  %s2301_s7 = inlined_call_operand.vmem [shape: f32[8,72], index: 7, kind: input, shape index: {}]   ;;  %s2302_s8 = inlined_call_operand.vmem [shape: f32[8,1], index: 8, kind: input, shape index: {}]   ;;  %s2303_s9 = inlined_call_operand.vmem [shape: f32[1,72], index: 9, kind: input, shape index: {}]   ;;  %s2304_s10 = inlined_call_operand.<no memory space> [shape: f32[1,1], index: 10, kind: input, shape index: {}]   ;;  %s2305_s11 = inlined_call_operand.vmem [shape: f32[3], index: 11, kind: input, shape index: {}]   ;;  %s2306_s12 = inlined_call_operand.vmem [shape: f32[2,1,256], index: 12, kind: output, shape index: {}]  }
   0x1   :  { %v17_v0 = vstv %s2304_s10 }
   0x2   :  { %18 = vst [vmem:[#allocation2] sm:$0x1] %v17_v0 }
   0x3   :  { %19 = vsyncpa [#allocation4], 0  ;;  %s1739_s23 = smov 0  }
   0x4 LB: > { %s1745_s24 = sadd.s32 4294967295, %s1659_s23   ;;  %p1291_p0 = scmp.ge.s32.totalorder %s1659_s23, 1  ;;  %s1659_s23 = sphi %s1739_s23, %s25_s23  }
   0x5   : > { %p313_p1 = scmp.lt.s32.totalorder %s1659_s23, 3  ;;  %s356_s26 = sshll.u32 %s2305_s11, 4  ;;  %s357_s26 = int_to_ptr.vmem [resolvable:$true] %s356_s26 }
   0x6   : > { %p1399_p3 = scmp.eq.s32.totalorder %s1745_s24, 0  ;;  %s1634_s28 = scalar_lea.vmem %s357_s26, 16 }
   0x7   : > { %p1752_p2 = pnand %p1291_p0, %p313_p1  ;;  %p1635_p6 = scmp.ne.s32.totalorder %s357_s26, %s1634_s28 }
   0x8   : > { %p1642_p10 = scmp.lt.s32.totalorder %s357_s26, %s357_s26  ;;  %p1643_p11 = scmp.lt.s32.totalorder %s1634_s28, %s1634_s28 }
   0x9   : > { %p1395_p4 = pneg %p1752_p2 }
   0xa   : > { %p1644_p12 = por %p1643_p11, %p1642_p10 }
   0xb   : > { %p1396_p5 = pnand %p1399_p3, %p1395_p4 }
   0xd   : > { %p1636_p7 = pneg %p1396_p5 }
   0xf   : > { %p1637_p8 = pnand %p1636_p7, %p1635_p6 }
  0x11   : > { %p1638_p9 = pneg %p1637_p8 }
  0x13   : > { %p1645_p13 = pnand %p1644_p12, %p1638_p9 }
  0x15   : > { %1648 = shalt.err (!%p1645_p13)
}
  0x16   : > { %s1661_s29 = smov [#allocation3]   ;;  %376 = sbr.rel (%p1752_p2) target bundleno = 2156 (0x86c), region = 68 }
  0x17   : > { %1398 = dma.vmem_to_smem (!%p1396_p5), %s357_s26, 16, %s1661_s29, [#allocation4]  }
  0x1d   : > { %1654 = dma.done.wait (%p1399_p3), [#allocation4], 16  }
  0x1e   : > { %1656 = vsyncadd (%p1399_p3), [#allocation4], 4294967280 }
  0x1f   : > { %382 = sfence }
  0x20   : > { %v426_v1 = vld [vmem:[%s2295_s1] sm:$0xff]  ;;  %v1662_v2 = vmov 0   ;;  %p417_p0 = scmp.lt.s32.totalorder %s1745_s24, 1  ;;  %v433_v4 = vlaneseq  ;;  %s1663_s20 = smov 127   ;;  %v1669_v53 = vmov 0.0   ;;  %v559_v54 = vld [vmem:[%s2298_s4 + $0x8] sm:$0xff] }
  0x21   : > { %1419 = vset.pattern.permute.xlu0 %v1662_v2  ;;  %1455 = vset.pattern.permute.xlu1 %v1662_v2  ;;  %v445_v3 = vld [vmem:[%s2296_s2] sm:$0xff]  ;;  %s1664_s21 = smov 1   ;;  %s1665_s22 = smov 15   ;;  %vm570_vm10 = vcmask 588800   ;;  %vm804_vm15 = vcmask 130048  }
  0x22   : > { %429 = vperm.xlu0 %1419, %v426_v1   ;;  %s2317_s24 = smov (!%p417_p0, %s1745_s24), 1  ;;  %v1779_v5 = vshrl.u32 %v433_v4, 7  ;;  %s1666_s25 = smov 113   ;;  %v1807_v20 = vand.u32 127, %v433_v4  ;;  %641 = vmatprep.mubr.f32.mxu0 %v1669_v53  ;;  %v558_v55 = vld [vmem:[%s2298_s4] sm:$0xff] }
  0x23   : > { %s1296_s16 = sshll.u32 %s2317_s24, 1  ;;  %s1667_s10 = smov 16  }
  0x24   : > { %s420_s19 = scalar_lea.vmem %s2294_s0, %s1296_s16  ;;  %v435_v6 = vsub.s32 0, %v1779_v5  ;;  %v439_v7 = vsub.s32 1, %v1779_v5  ;;  %v457_v21 = vadd.s32 128, %v1807_v20  ;;  %v462_v23 = vand.u32 15, %v1807_v20  ;;  %s1668_s26 = smov 112  }
  0x25   : > { %v425_v8 = vld [vmem:[%s420_s19] sm:$0x3]  ;;  %vm486_vm0 = vcmp.lt.s32.totalorder %v1807_v20, 1  ;;  %vm493_vm1 = vcmp.lt.s32.totalorder %v1807_v20, 113  ;;  %vm504_vm4 = vcmp.lt.s32.totalorder %v1807_v20, 127  ;;  %vm511_vm5 = vcmp.lt.s32.totalorder %v1807_v20, 15 }
  0x26   : > { %448 = vperm.xlu0 %1419, %v445_v3   ;;  %v436_v9 = vrot.slane %v425_v8, %v435_v6  ;;  %v440_v10 = vrot.slane %v425_v8, %v439_v7  ;;  %v469_v24 = vand.u32 15, %v457_v21  ;;  %vm1813_vm2 = vcmp.eq.s32.totalorder %v462_v23, 0  ;;  %s654_s18 = sld [smem:[#allocation3]]  ;;  %s1301_s14 = sld [smem:[#allocation3 + $0x1]] }
  0x27   : > { %vm1842_vm6 = vcmp.eq.s32.totalorder %v462_v23, 15  ;;  %vm530_vm8 = vcmp.lt.s32.totalorder %v1807_v20, 16  ;;  %vm549_vm9 = vcmp.lt.s32.totalorder %v1807_v20, 112  ;;  %s1303_s27 = sld [smem:[#allocation3 + $0x2]] }
  0x28   : > { %vm1817_vm3 = vcmp.eq.s32.totalorder %v469_v24, 0  ;;  %vm1846_vm7 = vcmp.eq.s32.totalorder %v469_v24, 15 }
  0xa1   : > { %v430_v11 = vpop.permute.xlu0 %429 }
  0xa2   : > { %v443_v12 = vmul.f32 %v436_v9, %v430_v11  ;;  %v444_v13 = vmul.f32 %v440_v10, %v430_v11 }
  0xa5   : > { %v449_v14 = vpop.permute.xlu0 %448 }
  0xa6   : > { %v451_v15 = vadd.f32 %v449_v14, %v443_v12  ;;  %v452_v16 = vadd.f32 %v449_v14, %v444_v13 }
  0xa8   : > { %v1790_v17 = vmax.f32 %v451_v15, 0.0  ;;  %v1792_v18 = vmax.f32 %v452_v16, 0.0 }
  0xaa   : > { %500 = vrot.lane.b32.xlu0 %v1790_v17, %s1663_s20  ;;  %v1420_v19 = vpack.i.bf16 %v1792_v18, %v1790_v17 }
  0xac   : > { %1421 = vrot.lane.b32.xlu1 %v1420_v19, %s1664_s21 }
  0xae   : > { %507 = vrot.lane.b32.xlu0 %v1790_v17, %s1665_s22 }
  0xb0   : > { %1426 = vrot.lane.b32.xlu1 %v1420_v19, %s1666_s25 }
  0xb4   : > { %502 = vrot.lane.b32.xlu1 %v1792_v18, %s1663_s20 }
  0xb8   : > { %509 = vrot.lane.b32.xlu1 %v1792_v18, %s1665_s22 }
 0x11c   : > { %v501_v32 = vpop.permute.xlu0 %500 }
 0x11e   : > { %v1422_v22 = vpop.permute.xlu1 %1421 }
 0x11f   : > { %v1424_v25 = vunpack.i.h.bf16 %v1422_v22  ;;  %v1423_v26 = vunpack.i.l.bf16 %v1422_v22 }
 0x120   : > { %v508_v44 = vpop.permute.xlu0 %507 }
 0x121   : > { %v487_v33 = vsel %vm486_vm0, %v1423_v26, %v1424_v25  ;;  %v488_v34 = vsel %vm486_vm0, %v1424_v25, %v1423_v26 }
 0x122   : > { %v1427_v27 = vpop.permute.xlu1 %1426 }
 0x123   : > { %v1429_v28 = vunpack.i.h.bf16 %v1427_v27  ;;  %v1428_v29 = vunpack.i.l.bf16 %v1427_v27 }
 0x125   : > { %v494_v35 = vsel %vm493_vm1, %v1428_v29, %v1429_v28  ;;  %v495_v36 = vsel %vm493_vm1, %v1429_v28, %v1428_v29 }
 0x126   : > { %v503_v37 = vpop.permute.xlu1 %502  ;;  %v1831_v38 = vsel %vm1813_vm2, %v494_v35, %v488_v34  ;;  %v499_v39 = vsel %vm1817_vm3, %v495_v36, %v487_v33  ;;  %v557_v36 = vld [vmem:[%s2297_s3 + $0x8] sm:$0xff] }
 0x127   : > { %v1430_v40 = vpack.i.bf16 %v1790_v17, %v1831_v38  ;;  %v1435_v41 = vpack.i.bf16 %v1792_v18, %v499_v39  ;;  %v505_v45 = vsel %vm504_vm4, %v501_v32, %v503_v37  ;;  %v506_v47 = vsel %vm504_vm4, %v503_v37, %v501_v32 }
 0x129   : > { %1431 = vrot.lane.b32.xlu0 %v1430_v40, %s1667_s10  ;;  %1436 = vrot.lane.b32.xlu1 %v1435_v41, %s1667_s10 }
 0x12a   : > { %v510_v46 = vpop.permute.xlu1 %509 }
 0x12b   : > { %v512_v48 = vsel %vm511_vm5, %v508_v44, %v510_v46  ;;  %v513_v49 = vsel %vm511_vm5, %v510_v46, %v508_v44 }
 0x12c   : > { %v516_v50 = vsel %vm1842_vm6, %v513_v49, %v505_v45  ;;  %v517_v51 = vsel %vm1846_vm7, %v512_v48, %v506_v47 }
 0x12d   : > { %1446 = vrot.lane.b32.xlu1 %v1430_v40, %s1668_s26  ;;  %v1440_v52 = vpack.i.bf16 %v517_v51, %v516_v50  ;;  %v1315_v23 = vpack.c.bf16 %v517_v51, %v1792_v18  ;;  %v1317_v26 = vpack.c.bf16 %v516_v50, %v1790_v17  ;;  %v556_v17 = vld [vmem:[%s2297_s3] sm:$0xff] }
 0x12f   : > { %1441 = vrot.lane.b32.xlu0 %v1440_v52, %s1667_s10 }
 0x131   : > { %541 = vrot.lane.b32.xlu1 %v516_v50, %s1668_s26 }
 0x133   : > { %1451 = vrot.lane.b32.xlu0 %v1435_v41, %s1668_s26  ;;  %v659_v41 = vstv %s654_s18 }
 0x135   : > { %562 = vperm.xlu1 %1455, %v558_v55  }
 0x137   : > { %547 = vrot.lane.b32.xlu0 %v517_v51, %s1668_s26 }
 0x13b   : > { %567 = vperm.xlu0 %1419, %v559_v54  }
 0x19b   : > { %v1432_v56 = vpop.permute.xlu0 %1431  ;;  %v1437_v57 = vpop.permute.xlu1 %1436 }
 0x19c   : > { %v1434_v58 = vunpack.i.h.bf16 %v1432_v56  ;;  %v1433_v59 = vunpack.i.l.bf16 %v1432_v56  ;;  %v1439_v60 = vunpack.i.h.bf16 %v1437_v57  ;;  %v1438_v61 = vunpack.i.l.bf16 %v1437_v57 }
 0x19e   : > { %v531_v62 = vsel %vm530_vm8, %v1433_v59, %v1438_v61  ;;  %v532_v63 = vsel %vm530_vm8, %v1434_v58, %v1439_v60  ;;  %v534_v0 = vsel %vm530_vm8, %v1438_v61, %v1433_v59  ;;  %v535_v1 = vsel %vm530_vm8, %v1439_v60, %v1434_v58 }
 0x19f   : > { %v1307_v2 = vpack.c.bf16 %v532_v63, %v531_v62  ;;  %v1309_v3 = vpack.c.bf16 %v535_v1, %v534_v0  ;;  %v1447_v10 = vpop.permute.xlu1 %1446 }
 0x1a0   : > { %v1449_v16 = vunpack.i.h.bf16 %v1447_v10  ;;  %v1448_v19 = vunpack.i.l.bf16 %v1447_v10 }
 0x1a1   : > { %v1442_v7 = vpop.permute.xlu0 %1441  ;;  %1308 = vmatprep.subr.bf16.mxu0 %v1307_v2 }
 0x1a2   : > { %v1444_v8 = vunpack.i.h.bf16 %v1442_v7  ;;  %v1443_v9 = vunpack.i.l.bf16 %v1442_v7  ;;  %1310 = vmatpush1.bf16.msra.mxu0 %v1309_v3 }
 0x1a3   : > { %v542_v33 = vpop.permute.xlu1 %541 }
 0x1a4   : > { %v533_v11 = vsel %vm530_vm8, %v1443_v9, %v1444_v8  ;;  %v536_v12 = vsel %vm530_vm8, %v1444_v8, %v1443_v9 }
 0x1a5   : > { %v1452_v13 = vpop.permute.xlu0 %1451  ;;  %v1311_v14 = vpack.c.bf16 %v499_v39, %v533_v11  ;;  %v1313_v15 = vpack.c.bf16 %v1831_v38, %v536_v12 }
 0x1a6   : > { %v1454_v21 = vunpack.i.h.bf16 %v1452_v13  ;;  %v1453_v22 = vunpack.i.l.bf16 %v1452_v13 }
 0x1a7   : > { %1312 = vmatprep.subr.bf16.mxu0 %v1311_v14 }
 0x1a8   : > { %1314 = vmatpush1.bf16.msra.mxu0 %v1313_v15  ;;  %v553_v24 = vsel %vm549_vm9, %v1453_v22, %v1448_v19  ;;  %v554_v25 = vsel %vm549_vm9, %v1454_v21, %v1449_v16  ;;  %v550_v28 = vsel %vm549_vm9, %v1448_v19, %v1453_v22  ;;  %v551_v29 = vsel %vm549_vm9, %v1449_v16, %v1454_v21 }
 0x1a9   : > { %1316 = vmatprep.subr.bf16.mxu0 %v1315_v23  ;;  %v1319_v27 = vpack.c.bf16 %v554_v25, %v553_v24  ;;  %v548_v32 = vpop.permute.xlu0 %547  ;;  %v1321_v18 = vpack.c.bf16 %v551_v29, %v550_v28 }
 0x1aa   : > { %v555_v34 = vsel %vm549_vm9, %v548_v32, %v542_v33  ;;  %v552_v35 = vsel %vm549_vm9, %v542_v33, %v548_v32 }
 0x1ac   : > { %1318 = vmatpush1.bf16.msra.mxu0 %v1317_v26 }
 0x1ad   : > { %1320 = vmatprep.subr.bf16.mxu0 %v1319_v27 }
 0x1b0   : > { %1322 = vmatpush1.bf16.msra.mxu0 %v1321_v18 }
 0x1b1   : > { %593 = vmatprep.subr.mxu0 %v555_v34 }
 0x1b4   : > { %594 = vmatpush1.msra.mxu0 %v552_v35  ;;  %v563_v37 = vpop.permute.xlu1 %562 }
 0x1b5   : > { %1298 = vmatmul.mubr.msk.f32.vlgmr.msra.gmra.mrb[0].mxu0 %vm570_vm10, %v556_v17 }
 0x1b6   : > { %647 = vmatprep.mubr.f32.mxu0 %v1669_v53 }
 0x1b9   : > { %1299 = vmatmul.mubr.msk.f32.gmra.mrb[2].mxu0 %vm570_vm10, %v557_v36 }
 0x1ba   : > { %1025 = vmatprep.mubr.f32.mxu0 %v1669_v53  ;;  %v568_v45 = vpop.permute.xlu0 %567 }
 0x288   : > { %v643_v38 = vpop.f32.mrb[0].mxu0 }
 0x289   : > { %v644_v39 = vadd.f32 %v643_v38, %v563_v37  ;;  %v645_v40 = vpop.f32.mrb[1].mxu0 }
 0x28a   : > { %v646_v44 = vadd.f32 %v645_v40, %v563_v37 }
 0x28b   : > { %v660_v47 = vmul.f32 %v659_v41, %v644_v39  ;;  %vm655_vm11 = vcmp.gt.f32.partialorder %v644_v39, 0.0 }
 0x28c   : > { %v649_v46 = vpop.f32.mrb[2].mxu0  ;;  %v661_v48 = vmul.f32 %v659_v41, %v646_v44  ;;  %vm656_vm12 = vcmp.gt.f32.partialorder %v646_v44, 0.0 }
 0x28d   : > { %v650_v49 = vadd.f32 %v649_v46, %v568_v45  ;;  %v651_v50 = vpop.f32.mrb[3].mxu0  ;;  %v1913_v55 = vsel %vm655_vm11, %v644_v39, %v660_v47 }
 0x28e   : > { %v652_v51 = vadd.f32 %v651_v50, %v568_v45  ;;  %v1915_v56 = vsel %vm656_vm12, %v646_v44, %v661_v48 }
 0x28f   : > { %vm657_vm13 = vcmp.gt.f32.partialorder %v650_v49, 0.0  ;;  %v662_v52 = vmul.f32 %v659_v41, %v650_v49 }
 0x290   : > { %vm658_vm14 = vcmp.gt.f32.partialorder %v652_v51, 0.0  ;;  %v663_v54 = vmul.f32 %v659_v41, %v652_v51 }
 0x291   : > { %v1917_v57 = vsel %vm657_vm13, %v650_v49, %v662_v52 }
 0x292   : > { %v1919_v58 = vsel %vm658_vm14, %v652_v51, %v663_v54  ;;  %v1923_v59 = vpack.i.bf16 %v1917_v57, %v1913_v55  ;;  %v1341_v62 = vpack.c.bf16 %v1917_v57, %v1913_v55 }
 0x293   : > { %v1927_v60 = vpack.i.bf16 %v1919_v58, %v1915_v56  ;;  %v1339_v61 = vpack.c.bf16 %v1919_v58, %v1915_v56 }
 0x294   : > { %1457 = vrot.lane.b32.xlu1 %v1923_v59, %s1664_s21 }
 0x295   : > { %1477 = vrot.lane.b32.xlu0 %v1927_v60, %s1664_s21 }
 0x298   : > { %1462 = vrot.lane.b32.xlu1 %v1923_v59, %s1666_s25 }
 0x299   : > { %1482 = vrot.lane.b32.xlu0 %v1927_v60, %s1666_s25 }
 0x29c   : > { %1467 = vrot.lane.b32.xlu1 %v1923_v59, %s1663_s20 }
 0x29d   : > { %1487 = vrot.lane.b32.xlu0 %v1927_v60, %s1663_s20 }
 0x2a0   : > { %1472 = vrot.lane.b32.xlu1 %v1923_v59, %s1665_s22 }
 0x2a1   : > { %1492 = vrot.lane.b32.xlu0 %v1927_v60, %s1665_s22 }
 0x306   : > { %v1458_v63 = vpop.permute.xlu1 %1457 }
 0x307   : > { %v1478_v0 = vpop.permute.xlu0 %1477  ;;  %v1460_v1 = vunpack.i.h.bf16 %v1458_v63  ;;  %v1459_v2 = vunpack.i.l.bf16 %v1458_v63 }
 0x308   : > { %v1480_v3 = vunpack.i.h.bf16 %v1478_v0  ;;  %v1479_v7 = vunpack.i.l.bf16 %v1478_v0 }
 0x30a   : > { %v1463_v8 = vpop.permute.xlu1 %1462  ;;  %v678_v14 = vsel %vm486_vm0, %v1479_v7, %v1459_v2  ;;  %v679_v15 = vsel %vm486_vm0, %v1480_v3, %v1460_v1  ;;  %v676_v24 = vsel %vm486_vm0, %v1459_v2, %v1479_v7  ;;  %v677_v25 = vsel %vm486_vm0, %v1460_v1, %v1480_v3 }
 0x30b   : > { %v1465_v9 = vunpack.i.h.bf16 %v1463_v8  ;;  %v1464_v10 = vunpack.i.l.bf16 %v1463_v8  ;;  %v1483_v11 = vpop.permute.xlu0 %1482 }
 0x30c   : > { %v1485_v12 = vunpack.i.h.bf16 %v1483_v11  ;;  %v1484_v13 = vunpack.i.l.bf16 %v1483_v11  ;;  %v798_v11 = vld [vmem:[%s2300_s6] sm:$0xff] }
 0x30e   : > { %v688_v16 = vsel %vm493_vm1, %v1464_v10, %v1484_v13  ;;  %v689_v19 = vsel %vm493_vm1, %v1465_v9, %v1485_v12  ;;  %v690_v21 = vsel %vm493_vm1, %v1484_v13, %v1464_v10  ;;  %v691_v22 = vsel %vm493_vm1, %v1485_v12, %v1465_v9  ;;  %v1468_v23 = vpop.permute.xlu1 %1467  ;;  %v797_v12 = vld [vmem:[%s2299_s5 + $0x8] sm:$0xff] }
 0x30f   : > { %v1488_v26 = vpop.permute.xlu0 %1487  ;;  %v1967_v27 = vsel %vm1813_vm2, %v688_v16, %v678_v14  ;;  %v1971_v28 = vsel %vm1813_vm2, %v689_v19, %v679_v15  ;;  %v1470_v29 = vunpack.i.h.bf16 %v1468_v23  ;;  %v1469_v32 = vunpack.i.l.bf16 %v1468_v23  ;;  %1300 = vmatprep.mubr.msk.f32.mxu1 %vm804_vm15, %v797_v12 }
 0x310   : > { %v1496_v18 = vpack.i.bf16 %v1971_v28, %v1967_v27  ;;  %v1977_v33 = vsel %vm1817_vm3, %v690_v21, %v676_v24  ;;  %v1490_v34 = vunpack.i.h.bf16 %v1488_v26  ;;  %v1489_v17 = vunpack.i.l.bf16 %v1488_v26 }
 0x311   : > { %v1981_v35 = vsel %vm1817_vm3, %v691_v22, %v677_v25  ;;  %v1337_v36 = vpack.c.bf16 %v1971_v28, %v1967_v27 }
 0x312   : > { %v1473_v37 = vpop.permute.xlu1 %1472  ;;  %1497 = vrot.lane.b32.xlu1 %v1496_v18, %s1667_s10  ;;  %v1506_v40 = vpack.i.bf16 %v1981_v35, %v1977_v33  ;;  %v1335_v46 = vpack.c.bf16 %v1981_v35, %v1977_v33  ;;  %v704_v47 = vsel %vm504_vm4, %v1469_v32, %v1489_v17  ;;  %v705_v48 = vsel %vm504_vm4, %v1470_v29, %v1490_v34 }
 0x313   : > { %v1475_v38 = vunpack.i.h.bf16 %v1473_v37  ;;  %v1474_v39 = vunpack.i.l.bf16 %v1473_v37  ;;  %v1493_v41 = vpop.permute.xlu0 %1492  ;;  %v706_v49 = vsel %vm504_vm4, %v1489_v17, %v1469_v32  ;;  %v707_v50 = vsel %vm504_vm4, %v1490_v34, %v1470_v29 }
 0x314   : > { %v1495_v44 = vunpack.i.h.bf16 %v1493_v41  ;;  %v1494_v45 = vunpack.i.l.bf16 %v1493_v41  ;;  %1507 = vrot.lane.b32.xlu0 %v1506_v40, %s1667_s10 }
 0x316   : > { %v716_v51 = vsel %vm511_vm5, %v1474_v39, %v1494_v45  ;;  %v717_v52 = vsel %vm511_vm5, %v1475_v38, %v1495_v44  ;;  %v718_v54 = vsel %vm511_vm5, %v1494_v45, %v1474_v39  ;;  %v719_v63 = vsel %vm511_vm5, %v1495_v44, %v1475_v38  ;;  %1502 = vrot.lane.b32.xlu1 %v1923_v59, %s1667_s10 }
 0x317   : > { %v2011_v0 = vsel %vm1842_vm6, %v718_v54, %v704_v47  ;;  %v2015_v1 = vsel %vm1842_vm6, %v719_v63, %v705_v48  ;;  %v2019_v2 = vsel %vm1846_vm7, %v716_v51, %v706_v49  ;;  %v2023_v3 = vsel %vm1846_vm7, %v717_v52, %v707_v50 }
 0x318   : > { %v1516_v7 = vpack.i.bf16 %v2015_v1, %v2011_v0  ;;  %1512 = vrot.lane.b32.xlu0 %v1927_v60, %s1667_s10  ;;  %v1521_v8 = vpack.i.bf16 %v2023_v3, %v2019_v2  ;;  %v1343_v9 = vpack.c.bf16 %v2023_v3, %v2019_v2  ;;  %v1345_v10 = vpack.c.bf16 %v2015_v1, %v2011_v0 }
 0x31a   : > { %1517 = vrot.lane.b32.xlu1 %v1516_v7, %s1667_s10 }
 0x31c   : > { %1522 = vrot.lane.b32.xlu0 %v1521_v8, %s1667_s10 }
 0x31e   : > { %1527 = vrot.lane.b32.xlu1 %v1496_v18, %s1668_s26 }
 0x320   : > { %1537 = vrot.lane.b32.xlu0 %v1506_v40, %s1668_s26 }
 0x322   : > { %1532 = vrot.lane.b32.xlu1 %v1923_v59, %s1668_s26 }
 0x324   : > { %1542 = vrot.lane.b32.xlu0 %v1927_v60, %s1668_s26 }
 0x326   : > { %1547 = vrot.lane.b32.xlu1 %v1516_v7, %s1668_s26 }
 0x328   : > { %1552 = vrot.lane.b32.xlu0 %v1521_v8, %s1668_s26 }
 0x32a   : > { %801 = vperm.xlu1 %1455, %v798_v11  }
 0x384   : > { %v1498_v13 = vpop.permute.xlu1 %1497 }
 0x385   : > { %v1500_v59 = vunpack.i.h.bf16 %v1498_v13  ;;  %v1499_v14 = vunpack.i.l.bf16 %v1498_v13 }
 0x386   : > { %v1508_v15 = vpop.permute.xlu0 %1507 }
 0x387   : > { %v1510_v60 = vunpack.i.h.bf16 %v1508_v15  ;;  %v1509_v16 = vunpack.i.l.bf16 %v1508_v15 }
 0x388   : > { %v1503_v19 = vpop.permute.xlu1 %1502 }
 0x389   : > { %v1505_v21 = vunpack.i.h.bf16 %v1503_v19  ;;  %v1504_v22 = vunpack.i.l.bf16 %v1503_v19  ;;  %v748_v23 = vsel %vm530_vm8, %v1499_v14, %v1509_v16  ;;  %v749_v24 = vsel %vm530_vm8, %v1500_v59, %v1510_v60 }
 0x38a   : > { %v754_v25 = vsel %vm530_vm8, %v1509_v16, %v1499_v14  ;;  %v755_v26 = vsel %vm530_vm8, %v1510_v60, %v1500_v59  ;;  %v1513_v29 = vpop.permute.xlu0 %1512  ;;  %v1323_v32 = vpack.c.bf16 %v749_v24, %v748_v23 }
 0x38b   : > { %v1325_v18 = vpack.c.bf16 %v755_v26, %v754_v25  ;;  %v1515_v34 = vunpack.i.h.bf16 %v1513_v29  ;;  %v1514_v17 = vunpack.i.l.bf16 %v1513_v29 }
 0x38c   : > { %v1518_v37 = vpop.permute.xlu1 %1517  ;;  %1324 = vmatprep.subr.bf16.mxu1 %v1323_v32 }
 0x38d   : > { %v1520_v38 = vunpack.i.h.bf16 %v1518_v37  ;;  %v1519_v39 = vunpack.i.l.bf16 %v1518_v37  ;;  %1326 = vmatpush1.bf16.msra.mxu1 %v1325_v18  ;;  %v750_v40 = vsel %vm530_vm8, %v1504_v22, %v1514_v17  ;;  %v751_v41 = vsel %vm530_vm8, %v1505_v21, %v1515_v34 }
 0x38e   : > { %v756_v44 = vsel %vm530_vm8, %v1514_v17, %v1504_v22  ;;  %v757_v45 = vsel %vm530_vm8, %v1515_v34, %v1505_v21  ;;  %v1523_v47 = vpop.permute.xlu0 %1522  ;;  %v1327_v48 = vpack.c.bf16 %v751_v41, %v750_v40  ;;  %v796_v17 = vld [vmem:[%s2299_s5] sm:$0xff] }
 0x38f   : > { %v1329_v49 = vpack.c.bf16 %v757_v45, %v756_v44  ;;  %v1525_v50 = vunpack.i.h.bf16 %v1523_v47  ;;  %v1524_v51 = vunpack.i.l.bf16 %v1523_v47 }
 0x390   : > { %1328 = vmatprep.subr.bf16.mxu1 %v1327_v48  ;;  %v1528_v52 = vpop.permute.xlu1 %1527 }
 0x391   : > { %1330 = vmatpush1.bf16.msra.mxu1 %v1329_v49  ;;  %v752_v54 = vsel %vm530_vm8, %v1519_v39, %v1524_v51  ;;  %v753_v63 = vsel %vm530_vm8, %v1520_v38, %v1525_v50  ;;  %v758_v7 = vsel %vm530_vm8, %v1524_v51, %v1519_v39  ;;  %v759_v8 = vsel %vm530_vm8, %v1525_v50, %v1520_v38 }
 0x392   : > { %v1538_v11 = vpop.permute.xlu0 %1537  ;;  %v1331_v12 = vpack.c.bf16 %v753_v63, %v752_v54  ;;  %v1333_v13 = vpack.c.bf16 %v759_v8, %v758_v7  ;;  %v1530_v15 = vunpack.i.h.bf16 %v1528_v52  ;;  %v1529_v60 = vunpack.i.l.bf16 %v1528_v52 }
 0x393   : > { %v1540_v16 = vunpack.i.h.bf16 %v1538_v11  ;;  %v1539_v19 = vunpack.i.l.bf16 %v1538_v11  ;;  %v882_v39 = vstv %s1301_s14 }
 0x394   : > { %1332 = vmatprep.subr.bf16.mxu1 %v1331_v12  ;;  %v1533_v59 = vpop.permute.xlu1 %1532 }
 0x395   : > { %1334 = vmatpush1.bf16.msra.mxu1 %v1333_v13  ;;  %v1535_v21 = vunpack.i.h.bf16 %v1533_v59  ;;  %v1534_v22 = vunpack.i.l.bf16 %v1533_v59  ;;  %v790_v35 = vsel %vm549_vm9, %v1539_v19, %v1529_v60  ;;  %v791_v27 = vsel %vm549_vm9, %v1540_v16, %v1530_v15 }
 0x396   : > { %1336 = vmatprep.subr.bf16.mxu1 %v1335_v46  ;;  %v1543_v14 = vpop.permute.xlu0 %1542  ;;  %v784_v56 = vsel %vm549_vm9, %v1529_v60, %v1539_v19  ;;  %v785_v55 = vsel %vm549_vm9, %v1530_v15, %v1540_v16 }
 0x397   : > { %v1545_v23 = vunpack.i.h.bf16 %v1543_v14  ;;  %v1544_v24 = vunpack.i.l.bf16 %v1543_v14  ;;  %v1349_v3 = vpack.c.bf16 %v785_v55, %v784_v56 }
 0x398   : > { %v1548_v33 = vpop.permute.xlu1 %1547 }
 0x399   : > { %1338 = vmatpush1.bf16.msra.mxu1 %v1337_v36  ;;  %v1550_v58 = vunpack.i.h.bf16 %v1548_v33  ;;  %v1347_v36 = vpack.c.bf16 %v791_v27, %v790_v35  ;;  %v792_v46 = vsel %vm549_vm9, %v1544_v24, %v1534_v22  ;;  %v793_v2 = vsel %vm549_vm9, %v1545_v23, %v1535_v21 }
 0x39a   : > { %1340 = vmatprep.subr.bf16.mxu1 %v1339_v61  ;;  %v1553_v28 = vpop.permute.xlu0 %1552  ;;  %v1549_v61 = vunpack.i.l.bf16 %v1548_v33  ;;  %v786_v25 = vsel %vm549_vm9, %v1534_v22, %v1544_v24  ;;  %v787_v26 = vsel %vm549_vm9, %v1535_v21, %v1545_v23 }
 0x39b   : > { %v1555_v57 = vunpack.i.h.bf16 %v1553_v28 }
 0x39d   : > { %1342 = vmatpush1.bf16.msra.mxu1 %v1341_v62  ;;  %v1554_v62 = vunpack.i.l.bf16 %v1553_v28  ;;  %v795_v1 = vsel %vm549_vm9, %v1555_v57, %v1550_v58  ;;  %v789_v18 = vsel %vm549_vm9, %v1550_v58, %v1555_v57 }
 0x39e   : > { %1344 = vmatprep.subr.bf16.mxu1 %v1343_v9  ;;  %v1351_v9 = vpack.c.bf16 %v793_v2, %v792_v46 }
 0x39f   : > { %v794_v0 = vsel %vm549_vm9, %v1554_v62, %v1549_v61  ;;  %v788_v32 = vsel %vm549_vm9, %v1549_v61, %v1554_v62  ;;  %v952_v61 = vld [vmem:[%s2302_s8] sm:$0xff] }
 0x3a0   : > { %v1355_v29 = vpack.c.bf16 %v795_v1, %v794_v0  ;;  %v1357_v34 = vpack.c.bf16 %v789_v18, %v788_v32 }
 0x3a1   : > { %1346 = vmatpush1.bf16.msra.mxu1 %v1345_v10  ;;  %v1353_v10 = vpack.c.bf16 %v787_v26, %v786_v25 }
 0x3a2   : > { %1348 = vmatprep.subr.bf16.mxu1 %v1347_v36 }
 0x3a5   : > { %1350 = vmatpush1.bf16.msra.mxu1 %v1349_v3 }
 0x3a6   : > { %1352 = vmatprep.subr.bf16.mxu1 %v1351_v9 }
 0x3a9   : > { %1354 = vmatpush1.bf16.msra.mxu1 %v1353_v10  ;;  %v802_v37 = vpop.permute.xlu1 %801 }
 0x3aa   : > { %1356 = vmatprep.subr.bf16.mxu1 %v1355_v29 }
 0x3ad   : > { %1358 = vmatpush1.bf16.msra.mxu1 %v1357_v34 }
 0x3b0   : > { %873 = vmatmul.mubr.f32.vlgmr.msra.gmra.mrb[0].mxu1 %v796_v17 }
 0x483   : > { %v874_v38 = vpop.f32.mrb[0].mxu1 }
 0x484   : > { %v875_v40 = vadd.f32 %v874_v38, %v802_v37  ;;  %v876_v41 = vpop.f32.mrb[1].mxu1 }
 0x485   : > { %v877_v44 = vadd.f32 %v876_v41, %v802_v37 }
 0x486   : > { %vm880_vm11 = vcmp.gt.f32.partialorder %v875_v40, 0.0  ;;  %v883_v45 = vmul.f32 %v882_v39, %v875_v40 }
 0x487   : > { %vm881_vm12 = vcmp.gt.f32.partialorder %v877_v44, 0.0  ;;  %v884_v47 = vmul.f32 %v882_v39, %v877_v44 }
 0x488   : > { %v2120_v48 = vsel %vm880_vm11, %v875_v40, %v883_v45 }
 0x489   : > { %v2122_v49 = vsel %vm881_vm12, %v877_v44, %v884_v47  ;;  %901 = vrot.lane.b32.xlu0 %v2120_v48, %s1663_s20 }
 0x48a   : > { %v1561_v50 = vpack.i.bf16 %v2122_v49, %v2120_v48 }
 0x48c   : > { %1562 = vrot.lane.b32.xlu1 %v1561_v50, %s1666_s25 }
 0x48d   : > { %1557 = vrot.lane.b32.xlu0 %v1561_v50, %s1664_s21 }
 0x490   : > { %903 = vrot.lane.b32.xlu1 %v2122_v49, %s1663_s20 }
 0x491   : > { %907 = vrot.lane.b32.xlu0 %v2120_v48, %s1665_s22 }
 0x494   : > { %909 = vrot.lane.b32.xlu1 %v2122_v49, %s1665_s22 }
 0x4fb   : > { %v902_v51 = vpop.permute.xlu0 %901 }
 0x4fe   : > { %v1563_v52 = vpop.permute.xlu1 %1562 }
 0x4ff   : > { %v1565_v54 = vunpack.i.h.bf16 %v1563_v52  ;;  %v1564_v63 = vunpack.i.l.bf16 %v1563_v52  ;;  %v1558_v7 = vpop.permute.xlu0 %1557 }
 0x500   : > { %v1560_v8 = vunpack.i.h.bf16 %v1558_v7  ;;  %v1559_v11 = vunpack.i.l.bf16 %v1558_v7 }
 0x501   : > { %v897_v12 = vsel %vm493_vm1, %v1564_v63, %v1565_v54  ;;  %v898_v13 = vsel %vm493_vm1, %v1565_v54, %v1564_v63 }
 0x502   : > { %v891_v59 = vsel %vm486_vm0, %v1559_v11, %v1560_v8  ;;  %v892_v14 = vsel %vm486_vm0, %v1560_v8, %v1559_v11  ;;  %v904_v15 = vpop.permute.xlu1 %903 }
 0x503   : > { %v899_v60 = vsel %vm1813_vm2, %v897_v12, %v892_v14  ;;  %v900_v16 = vsel %vm1817_vm3, %v898_v13, %v891_v59  ;;  %v908_v22 = vpop.permute.xlu0 %907  ;;  %v905_v24 = vsel %vm504_vm4, %v902_v51, %v904_v15  ;;  %v906_v33 = vsel %vm504_vm4, %v904_v15, %v902_v51 }
 0x504   : > { %v1566_v19 = vpack.i.bf16 %v2120_v48, %v899_v60  ;;  %v1571_v21 = vpack.i.bf16 %v2122_v49, %v900_v16  ;;  %v1035_v15 = vstv %s1303_s27 }
 0x506   : > { %v910_v23 = vpop.permute.xlu1 %909  ;;  %1567 = vrot.lane.b32.xlu0 %v1566_v19, %s1667_s10  ;;  %1572 = vrot.lane.b32.xlu1 %v1571_v21, %s1667_s10 }
 0x507   : > { %v911_v35 = vsel %vm511_vm5, %v908_v22, %v910_v23  ;;  %v912_v27 = vsel %vm511_vm5, %v910_v23, %v908_v22 }
 0x508   : > { %v913_v28 = vsel %vm1842_vm6, %v912_v27, %v905_v24  ;;  %v914_v56 = vsel %vm1846_vm7, %v911_v35, %v906_v33 }
 0x509   : > { %v1576_v58 = vpack.i.bf16 %v914_v56, %v913_v28  ;;  %v1367_v47 = vpack.c.bf16 %v914_v56, %v2122_v49  ;;  %v1369_v52 = vpack.c.bf16 %v913_v28, %v2120_v48  ;;  %v951_v48 = vld [vmem:[%s2301_s7] sm:$0xff] }
 0x50a   : > { %1582 = vrot.lane.b32.xlu1 %v1566_v19, %s1668_s26 }
 0x50b   : > { %1577 = vrot.lane.b32.xlu0 %v1576_v58, %s1667_s10 }
 0x50e   : > { %937 = vrot.lane.b32.xlu1 %v913_v28, %s1668_s26 }
 0x50f   : > { %1587 = vrot.lane.b32.xlu0 %v1571_v21, %s1668_s26 }
 0x512   : > { %955 = vperm.xlu1 %1455, %v952_v61  }
 0x513   : > { %943 = vrot.lane.b32.xlu0 %v914_v56, %s1668_s26 }
 0x578   : > { %v1568_v36 = vpop.permute.xlu0 %1567  ;;  %v1573_v55 = vpop.permute.xlu1 %1572 }
 0x579   : > { %v1570_v57 = vunpack.i.h.bf16 %v1568_v36  ;;  %v1569_v62 = vunpack.i.l.bf16 %v1568_v36  ;;  %v1575_v46 = vunpack.i.h.bf16 %v1573_v55  ;;  %v1574_v2 = vunpack.i.l.bf16 %v1573_v55 }
 0x57b   : > { %v931_v3 = vsel %vm530_vm8, %v1575_v46, %v1570_v57  ;;  %v930_v9 = vsel %vm530_vm8, %v1574_v2, %v1569_v62  ;;  %v927_v25 = vsel %vm530_vm8, %v1569_v62, %v1574_v2  ;;  %v928_v26 = vsel %vm530_vm8, %v1570_v57, %v1575_v46 }
 0x57c   : > { %v1361_v0 = vpack.c.bf16 %v931_v3, %v930_v9  ;;  %v1359_v1 = vpack.c.bf16 %v928_v26, %v927_v25  ;;  %v1583_v18 = vpop.permute.xlu1 %1582 }
 0x57d   : > { %v1578_v10 = vpop.permute.xlu0 %1577  ;;  %v1585_v40 = vunpack.i.h.bf16 %v1583_v18  ;;  %v1584_v41 = vunpack.i.l.bf16 %v1583_v18 }
 0x57e   : > { %v1580_v29 = vunpack.i.h.bf16 %v1578_v10  ;;  %v1579_v32 = vunpack.i.l.bf16 %v1578_v10  ;;  %1360 = vmatprep.subr.bf16.mxu0 %v1359_v1 }
 0x57f   : > { %1362 = vmatpush1.bf16.msra.mxu0 %v1361_v0 }
 0x580   : > { %v932_v34 = vsel %vm530_vm8, %v1580_v29, %v1579_v32  ;;  %v929_v17 = vsel %vm530_vm8, %v1579_v32, %v1580_v29  ;;  %v938_v11 = vpop.permute.xlu1 %937 }
 0x581   : > { %v1365_v37 = vpack.c.bf16 %v899_v60, %v932_v34  ;;  %v1588_v38 = vpop.permute.xlu0 %1587  ;;  %v1363_v39 = vpack.c.bf16 %v900_v16, %v929_v17  ;;  %v1105_v34 = vld [vmem:[#allocation2] sm:$0x1] }
 0x582   : > { %v1590_v44 = vunpack.i.h.bf16 %v1588_v38  ;;  %v1589_v45 = vunpack.i.l.bf16 %v1588_v38 }
 0x583   : > { %1364 = vmatprep.subr.bf16.mxu0 %v1363_v39 }
 0x584   : > { %1366 = vmatpush1.bf16.msra.mxu0 %v1365_v37  ;;  %v948_v50 = vsel %vm549_vm9, %v1589_v45, %v1584_v41  ;;  %v949_v51 = vsel %vm549_vm9, %v1590_v44, %v1585_v40  ;;  %v945_v54 = vsel %vm549_vm9, %v1584_v41, %v1589_v45  ;;  %v946_v63 = vsel %vm549_vm9, %v1585_v40, %v1590_v44 }
 0x585   : > { %1368 = vmatprep.subr.bf16.mxu0 %v1367_v47  ;;  %v1371_v7 = vpack.c.bf16 %v949_v51, %v948_v50  ;;  %v944_v8 = vpop.permute.xlu0 %943  ;;  %v1373_v49 = vpack.c.bf16 %v946_v63, %v945_v54 }
 0x586   : > { %v950_v12 = vsel %vm549_vm9, %v944_v8, %v938_v11  ;;  %v947_v13 = vsel %vm549_vm9, %v938_v11, %v944_v8 }
 0x588   : > { %1370 = vmatpush1.bf16.msra.mxu0 %v1369_v52 }
 0x589   : > { %1372 = vmatprep.subr.bf16.mxu0 %v1371_v7 }
 0x58c   : > { %1374 = vmatpush1.bf16.msra.mxu0 %v1373_v49 }
 0x58d   : > { %977 = vmatprep.subr.mxu0 %v950_v12 }
 0x590   : > { %978 = vmatpush1.msra.mxu0 %v947_v13 }
 0x591   : > { %1302 = vmatmul.mubr.msk.f32.vlgmr.msra.gmra.mrb[4].mxu0 %vm570_vm10, %v951_v48  ;;  %v956_v59 = vpop.permute.xlu1 %955 }
 0x592   : > { %1182 = vmatprep.mubr.f32.mxu0 %v1669_v53 }
 0x664   : > { %v1027_v14 = vpop.f32.mrb[4].mxu0 }
 0x665   : > { %v1028_v60 = vadd.f32 %v1027_v14, %v956_v59  ;;  %v1029_v16 = vpop.f32.mrb[5].mxu0 }
 0x666   : > { %v1030_v19 = vadd.f32 %v1029_v16, %v956_v59 }
 0x667   : > { %vm1033_vm13 = vcmp.gt.f32.partialorder %v1028_v60, 0.0  ;;  %v1036_v21 = vmul.f32 %v1035_v15, %v1028_v60 }
 0x668   : > { %vm1034_vm14 = vcmp.gt.f32.partialorder %v1030_v19, 0.0  ;;  %v1037_v22 = vmul.f32 %v1035_v15, %v1030_v19 }
 0x669   : > { %v2203_v23 = vsel %vm1033_vm13, %v1028_v60, %v1036_v21 }
 0x66a   : > { %v2205_v24 = vsel %vm1034_vm14, %v1030_v19, %v1037_v22  ;;  %1054 = vrot.lane.b32.xlu0 %v2203_v23, %s1663_s20 }
 0x66b   : > { %v1596_v53 = vpack.i.bf16 %v2205_v24, %v2203_v23 }
 0x66d   : > { %1597 = vrot.lane.b32.xlu1 %v1596_v53, %s1666_s25 }
 0x66e   : > { %1592 = vrot.lane.b32.xlu0 %v1596_v53, %s1664_s21 }
 0x671   : > { %1056 = vrot.lane.b32.xlu1 %v2205_v24, %s1663_s20 }
 0x672   : > { %1060 = vrot.lane.b32.xlu0 %v2203_v23, %s1665_s22 }
 0x675   : > { %1062 = vrot.lane.b32.xlu1 %v2205_v24, %s1665_s22 }
 0x6dc   : > { %v1055_v33 = vpop.permute.xlu0 %1054 }
 0x6df   : > { %v1598_v35 = vpop.permute.xlu1 %1597 }
 0x6e0   : > { %v1600_v27 = vunpack.i.h.bf16 %v1598_v35  ;;  %v1599_v28 = vunpack.i.l.bf16 %v1598_v35  ;;  %v1593_v56 = vpop.permute.xlu0 %1592 }
 0x6e1   : > { %v1595_v58 = vunpack.i.h.bf16 %v1593_v56  ;;  %v1594_v61 = vunpack.i.l.bf16 %v1593_v56 }
 0x6e2   : > { %v1050_v36 = vsel %vm493_vm1, %v1599_v28, %v1600_v27  ;;  %v1051_v55 = vsel %vm493_vm1, %v1600_v27, %v1599_v28 }
 0x6e3   : > { %v1044_v57 = vsel %vm486_vm0, %v1594_v61, %v1595_v58  ;;  %v1045_v62 = vsel %vm486_vm0, %v1595_v58, %v1594_v61  ;;  %v1057_v46 = vpop.permute.xlu1 %1056  ;;  %vm1221_vm0 = vcmp.lt.s32.totalorder %v433_v4, 256 }
 0x6e4   : > { %v1052_v2 = vsel %vm1813_vm2, %v1050_v36, %v1045_v62  ;;  %v1053_v3 = vsel %vm1817_vm3, %v1051_v55, %v1044_v57  ;;  %v1061_v26 = vpop.permute.xlu0 %1060  ;;  %v1058_v1 = vsel %vm504_vm4, %v1055_v33, %v1057_v46  ;;  %v1059_v30 = vsel %vm504_vm4, %v1057_v46, %v1055_v33 }
 0x6e5   : > { %v1601_v9 = vpack.i.bf16 %v2203_v23, %v1052_v2  ;;  %v1606_v25 = vpack.i.bf16 %v2205_v24, %v1053_v3 }
 0x6e7   : > { %v1063_v0 = vpop.permute.xlu1 %1062  ;;  %1602 = vrot.lane.b32.xlu0 %v1601_v9, %s1667_s10  ;;  %1607 = vrot.lane.b32.xlu1 %v1606_v25, %s1667_s10 }
 0x6e8   : > { %v1064_v31 = vsel %vm511_vm5, %v1061_v26, %v1063_v0  ;;  %v1065_v10 = vsel %vm511_vm5, %v1063_v0, %v1061_v26  ;;  %v1670_v0 = vmov 1966171168  }
 0x6e9   : > { %v1066_v29 = vsel %vm1842_vm6, %v1065_v10, %v1058_v1  ;;  %v1067_v32 = vsel %vm1846_vm7, %v1064_v31, %v1059_v30  ;;  %v1205_v1 = vunpack.c.l.s4 %v1670_v0 }
 0x6ea   : > { %v1611_v18 = vpack.i.bf16 %v1067_v32, %v1066_v29  ;;  %v1383_v15 = vpack.c.bf16 %v1067_v32, %v2205_v24  ;;  %v1385_v19 = vpack.c.bf16 %v1066_v29, %v2203_v23  ;;  %v1104_v23 = vld [vmem:[%s2303_s9] sm:$0x1] }
 0x6eb   : > { %1617 = vrot.lane.b32.xlu1 %v1601_v9, %s1668_s26 }
 0x6ec   : > { %1612 = vrot.lane.b32.xlu0 %v1611_v18, %s1667_s10  ;;  %s424_s10 = scalar_lea.vmem %s2306_s12, %s1296_s16 }
 0x6ef   : > { %1090 = vrot.lane.b32.xlu1 %v1066_v29, %s1668_s26 }
 0x6f0   : > { %1622 = vrot.lane.b32.xlu0 %v1606_v25, %s1668_s26 }
 0x6f3   : > { %1108 = vperm.xlu1 %1455, %v1105_v34  }
 0x6f4   : > { %1096 = vrot.lane.b32.xlu0 %v1067_v32, %s1668_s26 }
 0x759   : > { %v1603_v17 = vpop.permute.xlu0 %1602  ;;  %v1608_v37 = vpop.permute.xlu1 %1607 }
 0x75a   : > { %v1605_v42 = vunpack.i.h.bf16 %v1603_v17  ;;  %v1604_v38 = vunpack.i.l.bf16 %v1603_v17  ;;  %v1610_v39 = vunpack.i.h.bf16 %v1608_v37  ;;  %v1609_v43 = vunpack.i.l.bf16 %v1608_v37 }
 0x75c   : > { %v1084_v40 = vsel %vm530_vm8, %v1610_v39, %v1605_v42  ;;  %v1083_v41 = vsel %vm530_vm8, %v1609_v43, %v1604_v38  ;;  %v1080_v44 = vsel %vm530_vm8, %v1604_v38, %v1609_v43  ;;  %v1081_v45 = vsel %vm530_vm8, %v1605_v42, %v1610_v39 }
 0x75d   : > { %v1377_v47 = vpack.c.bf16 %v1084_v40, %v1083_v41  ;;  %v1375_v50 = vpack.c.bf16 %v1081_v45, %v1080_v44  ;;  %v1618_v63 = vpop.permute.xlu1 %1617 }
 0x75e   : > { %v1613_v51 = vpop.permute.xlu0 %1612  ;;  %v1620_v48 = vunpack.i.h.bf16 %v1618_v63  ;;  %v1619_v13 = vunpack.i.l.bf16 %v1618_v63 }
 0x75f   : > { %v1615_v52 = vunpack.i.h.bf16 %v1613_v51  ;;  %v1614_v54 = vunpack.i.l.bf16 %v1613_v51  ;;  %1376 = vmatprep.subr.bf16.mxu0 %v1375_v50 }
 0x760   : > { %1378 = vmatpush1.bf16.msra.mxu0 %v1377_v47 }
 0x761   : > { %v1085_v7 = vsel %vm530_vm8, %v1615_v52, %v1614_v54  ;;  %v1082_v8 = vsel %vm530_vm8, %v1614_v54, %v1615_v52  ;;  %v1091_v35 = vpop.permute.xlu1 %1090 }
 0x762   : > { %v1381_v49 = vpack.c.bf16 %v1052_v2, %v1085_v7  ;;  %v1623_v11 = vpop.permute.xlu0 %1622  ;;  %v1379_v12 = vpack.c.bf16 %v1053_v3, %v1082_v8 }
 0x763   : > { %v1625_v59 = vunpack.i.h.bf16 %v1623_v11  ;;  %v1624_v14 = vunpack.i.l.bf16 %v1623_v11 }
 0x764   : > { %1380 = vmatprep.subr.bf16.mxu0 %v1379_v12 }
 0x765   : > { %1382 = vmatpush1.bf16.msra.mxu0 %v1381_v49  ;;  %v1101_v60 = vsel %vm549_vm9, %v1624_v14, %v1619_v13  ;;  %v1102_v16 = vsel %vm549_vm9, %v1625_v59, %v1620_v48  ;;  %v1098_v21 = vsel %vm549_vm9, %v1619_v13, %v1624_v14  ;;  %v1099_v22 = vsel %vm549_vm9, %v1620_v48, %v1625_v59 }
 0x766   : > { %1384 = vmatprep.subr.bf16.mxu0 %v1383_v15  ;;  %v1387_v53 = vpack.c.bf16 %v1102_v16, %v1101_v60  ;;  %v1097_v33 = vpop.permute.xlu0 %1096  ;;  %v1389_v24 = vpack.c.bf16 %v1099_v22, %v1098_v21 }
 0x767   : > { %v1103_v27 = vsel %vm549_vm9, %v1097_v33, %v1091_v35  ;;  %v1100_v28 = vsel %vm549_vm9, %v1091_v35, %v1097_v33 }
 0x769   : > { %1386 = vmatpush1.bf16.msra.mxu0 %v1385_v19 }
 0x76a   : > { %1388 = vmatprep.subr.bf16.mxu0 %v1387_v53 }
 0x76d   : > { %1390 = vmatpush1.bf16.msra.mxu0 %v1389_v24 }
 0x76e   : > { %1134 = vmatprep.subr.mxu0 %v1103_v27 }
 0x771   : > { %1135 = vmatpush1.msra.mxu0 %v1100_v28 }
 0x772   : > { %1304 = vmatmul.mubr.msk.f32.vlgmr.msra.gmra.mrb[6].mxu0 %vm570_vm10, %v1104_v23  ;;  %v1109_v56 = vpop.permute.xlu1 %1108 }
 0x773   : > { %v1114_v58 = vrot.slane %v1109_v56, %v435_v6  ;;  %v1206_v6 = vunpack.c.0.s8 %v1205_v1 }
 0x775   : > { %v1209_v31 = vsub.s32 %v1206_v6, %v1779_v5 }
 0x845   : > { %v1184_v61 = vpop.f32.mrb[6].mxu0 }
 0x846   : > { %v1185_v36 = vadd.f32 %v1184_v61, %v1114_v58  ;;  %v1186_v55 = vpop.f32.mrb[7].mxu0 }
 0x847   : > { %v1187_v57 = vadd.f32 %v1186_v55, %v1114_v58 }
 0x848   : > { %v1189_v62 = vsub.f32 0.0, %v1185_v36 }
 0x849   : > { %v1190_v46 = vsub.f32 0.0, %v1187_v57 }
 0x84a   : > { %v1191_v2 = vmul.f32 1.442695, %v1189_v62 }
 0x84b   : > { %v1193_v3 = vmul.f32 1.442695, %v1190_v46 }
 0x84c   : > { %1626 = vpow2.f32 %v1191_v2 }
 0x84d   : > { %1628 = vpow2.f32 %v1193_v3 }
 0x856   : > { %v1627_v20 = vpop.eup %1626 }
 0x857   : > { %v1629_v9 = vpop.eup %1628  ;;  %v1195_v25 = vadd.f32 1.0, %v1627_v20 }
 0x858   : > { %v1196_v26 = vadd.f32 1.0, %v1629_v9 }
 0x859   : > { %1630 = vrcp.f32 %v1195_v25 }
 0x85a   : > { %1632 = vrcp.f32 %v1196_v26 }
 0x863   : > { %v1631_v30 = vpop.eup %1630 }
 0x864   : > { %v1633_v10 = vpop.eup %1632 }
 0x865   : > { %v1203_v29 = vcombine.low %v1631_v30, %v1633_v10 }
 0x867   : > { %v1210_v32 = vrot.slane %v1203_v29, %v1209_v31 }
 0x869   : > { %v1217_v18 = vrot.slane %v1210_v32, %v1209_v31 }
 0x86b   : > { %1223 = vst.msk [vmem:[%s424_s10] sm:$0x3] %vm1221_vm0, %v1217_v18 }
 0x86c PF: > { %s25_s23 = sadd.s32 1, %s1659_s23  }
 0x86d   : > { %p22_p1 = scmp.ge.s32.totalorder %s25_s23, 4  }
 0x86f   :  { %24 = sbr.rel (!%p22_p1) target bundleno = 4 (0x4), region = 103 }
 0x876   :  { %1243 = vsyncpa [#allocation4], 1 }
 0x877   :  { %1245 = vsyncpa [#allocation4 + $0x1], 1 }

</bundles_post_ra>
